<compile_context>
chip_gen: v7x
topology: tpu7x:2x2x1
jax: 0.10.0
libtpu: 0.0.40
codegen_flags: <defaults>
</compile_context>

<pallas_src>
import math

import jax
import jax.numpy as jnp
from jax.experimental import pallas as pl
from jax.experimental.pallas import tpu as pltpu


# ----------------------------------------------------------------------------- #
# Small helpers
# ----------------------------------------------------------------------------- #
def _cdiv(a, b):
    return -(-a // b)


def _round_up(a, b):
    return _cdiv(a, b) * b


def _vmem_plan():
    """(planning budget for blocks, scoped vmem_limit_bytes), generation-aware."""
    cap = 64 * 1024 * 1024                      # conservative v7x per-TC fallback
    try:
        cap = int(pltpu.get_tpu_info().vmem_capacity_bytes)
    except Exception:
        pass
    budget = int(cap * 0.55)                    # leave room for Mosaic scratch/sems
    limit = min(int(cap * 0.75), 112 * 1024 * 1024)
    return budget, limit


# ----------------------------------------------------------------------------- #
# Kernels
# ----------------------------------------------------------------------------- #
def gc_block_kernel(x_ref, w1_ref, w2_ref, w3_ref, b1_ref, b2_ref, b3_ref, o_ref):
    """One grid step = Tm sub-models x one batch tile; every layer is a lane-dense
    2-D matmul.

    x_ref : (TB, D)               shared flattened lagged input (compute dtype)
    w1_ref: (1, D, Tm*H0)         fused layer-1 slab (models packed on lanes)
    w2_ref: (1, Tm*H0, Tm*H1)     block-diagonal layer-2 weights
    w3_ref: (1, Tm*H1, Wp)        block-diagonal layer-3 weights, Wp = 128-padded
    b*_ref: (1, 1, ...)           per-layer biases (f32, lane-aligned per input)
    o_ref : (1, TB, Wp)           lane-dense slice of the concatenated output (f32)
    """
    cdt = x_ref.dtype

    h = jnp.dot(x_ref[...], w1_ref[0], preferred_element_type=jnp.float32)
    h = jnp.maximum(h + b1_ref[0], 0.0)                       # (TB, Tm*H0) f32

    h = jnp.dot(h.astype(cdt), w2_ref[0], preferred_element_type=jnp.float32)
    h = jnp.maximum(h + b2_ref[0], 0.0)                       # (TB, Tm*H1) f32

    out = jnp.dot(h.astype(cdt), w3_ref[0], preferred_element_type=jnp.float32)
    o_ref[0] = out + b3_ref[0]                                # (TB, Wp) f32


def gc_single_kernel(i_ref, x_ref, w1_ref, w2_ref, w3_ref,
                     b1_ref, b2_ref, b3_ref, o_ref):
    """Single sub-model forward; model selection done by the index_maps."""
    del i_ref  # consumed by the BlockSpec index_maps
    h = jnp.dot(x_ref[...], w1_ref[0], preferred_element_type=jnp.float32)
    h = jnp.maximum(h + b1_ref[0], 0.0)
    h = jnp.dot(h, w2_ref[0], preferred_element_type=jnp.float32)
    h = jnp.maximum(h + b2_ref[0], 0.0)
    o_ref[...] = jnp.dot(h, w3_ref[0], preferred_element_type=jnp.float32) + b3_ref[0]


# ----------------------------------------------------------------------------- #
# Block-size selection (lane cap bounds O(Tm^2) waste; VMEM budget bounds bytes)
# ----------------------------------------------------------------------------- #
def _choose_model_block(in_dim, D, h0, h1, out_dim, tb, weight_bytes, budget_bytes,
                        lane_cap=512):
    def step_bytes(tm):
        th0, th1 = tm * h0, tm * h1
        wp = _round_up(max(tm * out_dim, 1), 128)
        w = (D * th0 + th0 * th1 + th1 * wp) * weight_bytes
        b = (th0 + th1 + wp) * 4
        out = tb * wp * 4
        x = tb * D * weight_bytes
        acts = tb * (th0 + th1) * 4
        # 2x for double-buffered blocks, plus activation headroom.
        return 2 * (w + b + out + x) + acts

    # Cap tm so tm*H0 / tm*H1 stay <= lane_cap lanes (bounds block-diag redundancy).
    tm = min(in_dim, max(1, lane_cap // max(h0, h1, 1)))
    while tm > 1 and step_bytes(tm) > budget_bytes:
        tm -= 1
    if tm < in_dim:
        # Prefer tm that makes tm*H0 a 128-lane multiple (no masked lanes).
        align = 128 // math.gcd(128, max(h0, 1))
        if align <= tm:
            tm = (tm // align) * align
    n_blocks = _cdiv(in_dim, tm)
    return int(tm), int(n_blocks)


# ----------------------------------------------------------------------------- #
# One-time parameter packing (hoisted out of the forward pass; cache the result)
# ----------------------------------------------------------------------------- #
def pack_gc_params(params, *, compute_dtype=jnp.bfloat16, max_models_per_step=None,
                   batch_tile=256, lane_cap=512, min_model_blocks=2):
    """Repack stacked per-model weights into the kernel's streaming layout.

    Returns a dict holding the fused layer-1 slab, block-diagonal layer-2/3
    weights (output width zero-padded to a 128 multiple), per-layer concatenated
    biases, and metadata.  Call once and reuse across gc_forward calls.
    """
    w1, b1 = params["w1"], params["b1"]
    w2, b2 = params["w2"], params["b2"]
    w3, b3 = params["w3"], params["b3"]

    in_dim, D, H0 = w1.shape
    H1 = w2.shape[2]
    out_dim = w3.shape[2]

    budget, vmem_limit = _vmem_plan()
    wbytes = jnp.dtype(compute_dtype).itemsize
    tm, n_blocks = _choose_model_block(in_dim, D, H0, H1, out_dim, batch_tile,
                                       wbytes, budget, lane_cap)
    if max_models_per_step is not None:
        tm = max(1, min(tm, int(max_models_per_step)))
        n_blocks = _cdiv(in_dim, tm)
    # Guarantee >=2 grid iterations on the (parallel) model axis when possible,
    # so both v7x TensorCores get work even for single-batch-tile calls.
    if min_model_blocks and in_dim >= min_model_blocks and n_blocks < min_model_blocks:
        tm = _cdiv(in_dim, int(min_model_blocks))
        n_blocks = _cdiv(in_dim, tm)
    M_pad = tm * n_blocks

    if M_pad != in_dim:
        mpad = ((0, M_pad - in_dim),)
        w1p = jnp.pad(w1, mpad + ((0, 0), (0, 0)))
        w2p = jnp.pad(w2, mpad + ((0, 0), (0, 0)))
        w3p = jnp.pad(w3, mpad + ((0, 0), (0, 0)))
        b1p = jnp.pad(b1, mpad + ((0, 0), (0, 0)))
        b2p = jnp.pad(b2, mpad + ((0, 0), (0, 0)))
        b3p = jnp.pad(b3, mpad + ((0, 0), (0, 0)))
    else:
        w1p, w2p, w3p, b1p, b2p, b3p = w1, w2, w3, b1, b2, b3

    TH0, TH1 = tm * H0, tm * H1
    Wp = _round_up(max(tm * out_dim, 1), 128)   # lane-dense (128-multiple) store

    # Fused layer-1 slabs: (n_blocks, D, Tm*H0); columns are model-major packed.
    w1_slab = (w1p.astype(jnp.float32)
                  .transpose(1, 0, 2)                   # (D, M_pad, H0)
                  .reshape(D, n_blocks, TH0)
                  .transpose(1, 0, 2))                  # (n_blocks, D, Tm*H0)

    # Per-block block-diagonal layer-2/3 weights (zero cross-model blocks).
    eye_tm = jnp.eye(tm, dtype=jnp.float32)
    w2_bd = jnp.einsum('gmij,mn->gminj',
                       w2p.astype(jnp.float32).reshape(n_blocks, tm, H0, H1),
                       eye_tm).reshape(n_blocks, TH0, TH1)
    w3_bd = jnp.einsum('gmij,mn->gminj',
                       w3p.astype(jnp.float32).reshape(n_blocks, tm, H1, out_dim),
                       eye_tm).reshape(n_blocks, TH1, tm * out_dim)
    if Wp != tm * out_dim:
        w3_bd = jnp.pad(w3_bd, ((0, 0), (0, 0), (0, Wp - tm * out_dim)))

    # Per-layer concatenated biases (kept f32; each input is lane-aligned on its own).
    b1_cat = b1p.astype(jnp.float32).reshape(n_blocks, 1, TH0)
    b2_cat = b2p.astype(jnp.float32).reshape(n_blocks, 1, TH1)
    b3_cat = b3p.astype(jnp.float32).reshape(n_blocks, 1, tm * out_dim)
    if Wp != tm * out_dim:
        b3_cat = jnp.pad(b3_cat, ((0, 0), (0, 0), (0, Wp - tm * out_dim)))

    return {
        "w1_slab": w1_slab.astype(compute_dtype),
        "w2_bd": w2_bd.astype(compute_dtype),
        "w3_bd": w3_bd.astype(compute_dtype),
        "b1_cat": b1_cat,
        "b2_cat": b2_cat,
        "b3_cat": b3_cat,
        "meta": dict(in_dim=in_dim, D=D, H0=H0, H1=H1, out_dim=out_dim,
                     tm=tm, n_blocks=n_blocks, w_pad=Wp,
                     compute_dtype=compute_dtype, batch_tile=int(batch_tile),
                     vmem_limit=int(vmem_limit)),
    }


# ----------------------------------------------------------------------------- #
# Forward pass
# ----------------------------------------------------------------------------- #
def _gc_forward_ensemble(x, packed):
    meta = packed["meta"]
    in_dim, D = meta["in_dim"], meta["D"]
    H0, H1, out_dim = meta["H0"], meta["H1"], meta["out_dim"]
    tm, nb, Wp = meta["tm"], meta["n_blocks"], meta["w_pad"]
    cdt = meta["compute_dtype"]
    TH0, TH1 = tm * H0, tm * H1

    B = x.shape[0]
    # TODO(synk): x.reshape(B, lag*in_dim) must match the torch g_i flatten order.
    x_flat = x.reshape(B, D).astype(cdt)

    # Batch tiling: sublane-aligned tiles, pipelined & megacore-shardable.
    TB = _round_up(min(meta["batch_tile"], _round_up(B, 8)), 8)
    nb_b = _cdiv(B, TB)
    B_pad = nb_b * TB
    if B_pad != B:
        x_flat = jnp.pad(x_flat, ((0, B_pad - B), (0, 0)))

    wbytes = jnp.dtype(cdt).itemsize
    flops = 2 * B_pad * nb * (D * TH0 + TH0 * TH1 + TH1 * Wp)
    bytes_accessed = (nb * (D * TH0 + TH0 * TH1 + TH1 * Wp) * wbytes
                      + nb * (TH0 + TH1 + Wp) * 4
                      + B_pad * D * wbytes
                      + nb * B_pad * Wp * 4)

    out = pl.pallas_call(
        gc_block_kernel,
        out_shape=jax.ShapeDtypeStruct((nb, B_pad, Wp), jnp.float32),
        grid_spec=pltpu.PrefetchScalarGridSpec(
            num_scalar_prefetch=0,
            grid=(nb, nb_b),             # batch innermost -> weight blocks stay resident
            in_specs=[
                pl.BlockSpec((TB, D), lambda g, b: (b, 0)),
                pl.BlockSpec((1, D, TH0), lambda g, b: (g, 0, 0)),
                pl.BlockSpec((1, TH0, TH1), lambda g, b: (g, 0, 0)),
                pl.BlockSpec((1, TH1, Wp), lambda g, b: (g, 0, 0)),
                pl.BlockSpec((1, 1, TH0), lambda g, b: (g, 0, 0)),
                pl.BlockSpec((1, 1, TH1), lambda g, b: (g, 0, 0)),
                pl.BlockSpec((1, 1, Wp), lambda g, b: (g, 0, 0)),
            ],
            out_specs=pl.BlockSpec((1, TB, Wp), lambda g, b: (g, b, 0)),
        ),
        compiler_params=pltpu.CompilerParams(
            dimension_semantics=("parallel", "parallel"),
            vmem_limit_bytes=meta["vmem_limit"]),
        cost_estimate=pl.CostEstimate(flops=int(flops), transcendentals=0,
                                      bytes_accessed=int(bytes_accessed)),
    )(x_flat, packed["w1_slab"], packed["w2_bd"], packed["w3_bd"],
      packed["b1_cat"], packed["b2_cat"], packed["b3_cat"])

    # (nb, B_pad, Wp) -> (B, in_dim*out_dim): drop the per-block 128-lane padding
    # and the padded tail models.  Kernel stores were already lane-dense, which is
    # what matters for TPU; this trim is wrapper-side.
    out = out.transpose(1, 0, 2)[:, :, :tm * out_dim].reshape(B_pad, nb * tm * out_dim)
    return out[:B, : in_dim * out_dim]


def _gc_forward_single(x, params, i):
    """Single sub-model forward: O(1) in in_dim via scalar-prefetch index_maps.

    Kept simple / f32 (per review: excluded from perf tuning)."""
    w1, b1 = params["w1"], params["b1"]
    w2, b2 = params["w2"], params["b2"]
    w3, b3 = params["w3"], params["b3"]
    in_dim, D, H0 = w1.shape
    H1 = w2.shape[2]
    out_dim = w3.shape[2]

    B = x.shape[0]
    B_pad = _round_up(B, 8)
    x_flat = x.reshape(B, D).astype(jnp.float32)
    if B_pad != B:
        x_flat = jnp.pad(x_flat, ((0, B_pad - B), (0, 0)))

    i_arr = jnp.asarray([i], dtype=jnp.int32)
    out = pl.pallas_call(
        gc_single_kernel,
        out_shape=jax.ShapeDtypeStruct((B_pad, out_dim), jnp.float32),
        grid_spec=pltpu.PrefetchScalarGridSpec(
            num_scalar_prefetch=1,
            grid=(1,),
            in_specs=[
                pl.BlockSpec((B_pad, D), lambda g, idx: (0, 0)),
                pl.BlockSpec((1, D, H0), lambda g, idx: (idx[0], 0, 0)),
                pl.BlockSpec((1, H0, H1), lambda g, idx: (idx[0], 0, 0)),
                pl.BlockSpec((1, H1, out_dim), lambda g, idx: (idx[0], 0, 0)),
                pl.BlockSpec((1, 1, H0), lambda g, idx: (idx[0], 0, 0)),
                pl.BlockSpec((1, 1, H1), lambda g, idx: (idx[0], 0, 0)),
                pl.BlockSpec((1, 1, out_dim), lambda g, idx: (idx[0], 0, 0)),
            ],
            out_specs=pl.BlockSpec((B_pad, out_dim), lambda g, idx: (0, 0)),
        ),
        compiler_params=pltpu.CompilerParams(
            dimension_semantics=("arbitrary",),
            vmem_limit_bytes=_vmem_plan()[1]),
    )(i_arr, x_flat, w1, w2, w3, b1, b2, b3)
    return out[:B]


def gc_forward(x, params, *, packed=None, i=None, first_layer_index=0,
               compute_dtype=jnp.bfloat16, max_models_per_step=None, batch_tile=256):
    """Pallas implementation of GC.forward.

    x: (batch, lag, in_dim) float32
    params: dict of stacked per-model weights (leading axis = in_dim).
    packed: optional result of pack_gc_params(params, ...) to reuse across calls.
    Returns (batch, in_dim*out_dim) if i is None, else (batch, out_dim).
    """
    # TODO(synk): first_layer_index selects among alternative first layers in some
    # g_i variants; the concrete g_i here has a single first layer, so it is unused.
    del first_layer_index

    if i is not None:
        return _gc_forward_single(x, params, int(i))

    if packed is None:
        packed = pack_gc_params(params, compute_dtype=compute_dtype,
                                max_models_per_step=max_models_per_step,
                                batch_tile=batch_tile)
    return _gc_forward_ensemble(x, packed)


# ----------------------------------------------------------------------------- #
# Deterministic parameter construction (stacked across the in_dim sub-models).
# ----------------------------------------------------------------------------- #
def init_gc_params(key, in_dim, lag, h_dims, out_dim):
    D = in_dim * lag
    H0, H1 = h_dims
    ks = jax.random.split(key, 6)
    scale = 0.1
    return {
        "w1": scale * jax.random.normal(ks[0], (in_dim, D, H0), jnp.float32),
        "b1": scale * jax.random.normal(ks[1], (in_dim, 1, H0), jnp.float32),
        "w2": scale * jax.random.normal(ks[2], (in_dim, H0, H1), jnp.float32),
        "b2": scale * jax.random.normal(ks[3], (in_dim, 1, H1), jnp.float32),
        "w3": scale * jax.random.normal(ks[4], (in_dim, H1, out_dim), jnp.float32),
        "b3": scale * jax.random.normal(ks[5], (in_dim, 1, out_dim), jnp.float32),
    }


def gc_reference(x, params):
    """Pure-JAX reference mirroring the PyTorch forward (i=None)."""
    B = x.shape[0]
    x_flat = x.reshape(B, -1)
    outs = []
    for m in range(params["w1"].shape[0]):
        h = jnp.maximum(x_flat @ params["w1"][m] + params["b1"][m], 0.0)
        h = jnp.maximum(h @ params["w2"][m] + params["b2"][m], 0.0)
        outs.append(h @ params["w3"][m] + params["b3"][m])
    return jnp.concatenate(outs, axis=1)


if __name__ == "__main__":
    # Small shapes consistent with the module: in_dim sub-models, lagged input.
    batch, in_dim, lag = 2, 4, 8
    h_dims, out_dim = (16, 16), 1

    key = jax.random.PRNGKey(0)
    k_x, k_x2, k_p = jax.random.split(key, 3)
    x = jax.random.normal(k_x, (batch, lag, in_dim), jnp.float32)
    params = init_gc_params(k_p, in_dim, lag, h_dims, out_dim)
    ref = gc_reference(x, params)

    # 1) f32 streaming path: exact check of packing / blocking / 128-padded stores.
    packed_f32 = pack_gc_params(params, compute_dtype=jnp.float32)
    out = jax.block_until_ready(gc_forward(x, params, packed=packed_f32))
    assert out.shape == (batch, in_dim * out_dim), out.shape
    assert jnp.allclose(out, ref, atol=1e-4, rtol=1e-4), "f32 forward mismatch"

    # 2) default bf16 streaming path; pack once, reuse (hoisted param prep).
    packed_bf16 = pack_gc_params(params)
    out_bf = jax.block_until_ready(gc_forward(x, params, packed=packed_bf16))
    out_bf2 = jax.block_until_ready(gc_forward(x, params, packed=packed_bf16))
    assert out_bf.shape == (batch, in_dim * out_dim), out_bf.shape
    assert jnp.allclose(out_bf, ref, atol=5e-2, rtol=5e-2), "bf16 forward mismatch"
    assert jnp.allclose(out_bf, out_bf2), "cached-pack forward not deterministic"

    # 3) forced multi-block model axis (exercises model-axis padding), exact in f32.
    packed_mb = pack_gc_params(params, compute_dtype=jnp.float32,
                               max_models_per_step=3)
    out_mb = jax.block_until_ready(gc_forward(x, params, packed=packed_mb))
    assert jnp.allclose(out_mb, ref, atol=1e-4, rtol=1e-4), "blocked forward mismatch"

    # 4) batch tiling (multiple batch grid steps + batch padding), exact in f32.
    xb = jax.random.normal(k_x2, (10, lag, in_dim), jnp.float32)
    refb = gc_reference(xb, params)
    packed_bt = pack_gc_params(params, compute_dtype=jnp.float32, batch_tile=8)
    out_bt = jax.block_until_ready(gc_forward(xb, params, packed=packed_bt))
    assert out_bt.shape == (10, in_dim * out_dim), out_bt.shape
    assert jnp.allclose(out_bt, refb, atol=1e-4, rtol=1e-4), "batch-tiled mismatch"

    # 5) single sub-model forward (i given): O(1) in in_dim via scalar prefetch.
    out_i = jax.block_until_ready(gc_forward(x, params, i=1))
    assert out_i.shape == (batch, out_dim), out_i.shape
    assert jnp.allclose(out_i, ref[:, out_dim:2 * out_dim], atol=1e-4, rtol=1e-4)

    print("KERNEL_OK")
</pallas_src>

<mosaic_0001>
module attributes {stable_mosaic.version = 11 : i64} {
  func.func @gc_block_kernel(%arg0: i32, %arg1: i32, %arg2: memref<8x32xf32, #tpu.memory_space<vmem>>, %arg3: memref<1x32x32xf32, #tpu.memory_space<vmem>>, %arg4: memref<1x32x32xf32, #tpu.memory_space<vmem>>, %arg5: memref<1x32x128xf32, #tpu.memory_space<vmem>>, %arg6: memref<1x1x32xf32, #tpu.memory_space<vmem>>, %arg7: memref<1x1x32xf32, #tpu.memory_space<vmem>>, %arg8: memref<1x1x128xf32, #tpu.memory_space<vmem>>, %arg9: memref<1x8x128xf32, #tpu.memory_space<vmem>>) attributes {dimension_semantics = [#tpu.dimension_semantics<parallel>, #tpu.dimension_semantics<parallel>], iteration_bounds = array<i64: 2, 1>, scalar_prefetch = 0 : i64, scratch_operands = 0 : i64, tpu.core_type = #tpu.core_type<tc>, window_params = [{transform_indices = @transform_0, window_bounds = array<i64: 8, 32>}, {transform_indices = @transform_1, window_bounds = array<i64: 1, 32, 32>}, {transform_indices = @transform_2, window_bounds = array<i64: 1, 32, 32>}, {transform_indices = @transform_3, window_bounds = array<i64: 1, 32, 128>}, {transform_indices = @transform_4, window_bounds = array<i64: 1, 1, 32>}, {transform_indices = @transform_5, window_bounds = array<i64: 1, 1, 32>}, {transform_indices = @transform_6, window_bounds = array<i64: 1, 1, 128>}, {transform_indices = @transform_7, window_bounds = array<i64: 1, 8, 128>}]} {
    %c0 = arith.constant 0 : index
    %c0_0 = arith.constant 0 : index
    %0 = vector.load %arg2[%c0, %c0_0] : memref<8x32xf32, #tpu.memory_space<vmem>>, vector<8x32xf32>
    %c0_1 = arith.constant 0 : index
    %c0_2 = arith.constant 0 : index
    %c0_3 = arith.constant 0 : index
    %1 = vector.load %arg3[%c0_1, %c0_2, %c0_3] : memref<1x32x32xf32, #tpu.memory_space<vmem>>, vector<1x32x32xf32>
    %2 = vector.shape_cast %1 : vector<1x32x32xf32> to vector<32x32xf32>
    %cst = arith.constant dense<0.000000e+00> : vector<8x32xf32>
    %3 = tpu.matmul %0, %2, %cst {dimension_numbers = #tpu.dot_dimension_numbers<[1], [0], [0], [1], [0, 0, 1, 1], [], []>} : vector<8x32xf32>, vector<32x32xf32>, vector<8x32xf32> -> vector<8x32xf32>
    %c0_4 = arith.constant 0 : index
    %c0_5 = arith.constant 0 : index
    %c0_6 = arith.constant 0 : index
    %4 = vector.load %arg6[%c0_4, %c0_5, %c0_6] : memref<1x1x32xf32, #tpu.memory_space<vmem>>, vector<1x1x32xf32>
    %5 = vector.shape_cast %4 : vector<1x1x32xf32> to vector<1x32xf32>
    %6 = vector.broadcast %5 : vector<1x32xf32> to vector<8x32xf32>
    %7 = arith.addf %3, %6 : vector<8x32xf32>
    %cst_7 = arith.constant 0.000000e+00 : f32
    %8 = vector.broadcast %cst_7 : f32 to vector<8x32xf32>
    %9 = arith.maximumf %7, %8 : vector<8x32xf32>
    %c0_8 = arith.constant 0 : index
    %c0_9 = arith.constant 0 : index
    %c0_10 = arith.constant 0 : index
    %10 = vector.load %arg4[%c0_8, %c0_9, %c0_10] : memref<1x32x32xf32, #tpu.memory_space<vmem>>, vector<1x32x32xf32>
    %11 = vector.shape_cast %10 : vector<1x32x32xf32> to vector<32x32xf32>
    %cst_11 = arith.constant dense<0.000000e+00> : vector<8x32xf32>
    %12 = tpu.matmul %9, %11, %cst_11 {dimension_numbers = #tpu.dot_dimension_numbers<[1], [0], [0], [1], [0, 0, 1, 1], [], []>} : vector<8x32xf32>, vector<32x32xf32>, vector<8x32xf32> -> vector<8x32xf32>
    %c0_12 = arith.constant 0 : index
    %c0_13 = arith.constant 0 : index
    %c0_14 = arith.constant 0 : index
    %13 = vector.load %arg7[%c0_12, %c0_13, %c0_14] : memref<1x1x32xf32, #tpu.memory_space<vmem>>, vector<1x1x32xf32>
    %14 = vector.shape_cast %13 : vector<1x1x32xf32> to vector<1x32xf32>
    %15 = vector.broadcast %14 : vector<1x32xf32> to vector<8x32xf32>
    %16 = arith.addf %12, %15 : vector<8x32xf32>
    %cst_15 = arith.constant 0.000000e+00 : f32
    %17 = vector.broadcast %cst_15 : f32 to vector<8x32xf32>
    %18 = arith.maximumf %16, %17 : vector<8x32xf32>
    %c0_16 = arith.constant 0 : index
    %c0_17 = arith.constant 0 : index
    %c0_18 = arith.constant 0 : index
    %19 = vector.load %arg5[%c0_16, %c0_17, %c0_18] : memref<1x32x128xf32, #tpu.memory_space<vmem>>, vector<1x32x128xf32>
    %20 = vector.shape_cast %19 : vector<1x32x128xf32> to vector<32x128xf32>
    %cst_19 = arith.constant dense<0.000000e+00> : vector<8x128xf32>
    %21 = tpu.matmul %18, %20, %cst_19 {dimension_numbers = #tpu.dot_dimension_numbers<[1], [0], [0], [1], [0, 0, 1, 1], [], []>} : vector<8x32xf32>, vector<32x128xf32>, vector<8x128xf32> -> vector<8x128xf32>
    %c0_20 = arith.constant 0 : index
    %c0_21 = arith.constant 0 : index
    %c0_22 = arith.constant 0 : index
    %22 = vector.load %arg8[%c0_20, %c0_21, %c0_22] : memref<1x1x128xf32, #tpu.memory_space<vmem>>, vector<1x1x128xf32>
    %23 = vector.shape_cast %22 : vector<1x1x128xf32> to vector<1x128xf32>
    %24 = vector.broadcast %23 : vector<1x128xf32> to vector<8x128xf32>
    %25 = arith.addf %21, %24 : vector<8x128xf32>
    %c0_23 = arith.constant 0 : index
    %c0_24 = arith.constant 0 : index
    %c0_25 = arith.constant 0 : index
    %26 = vector.load %arg9[%c0_23, %c0_24, %c0_25] : memref<1x8x128xf32, #tpu.memory_space<vmem>>, vector<1x8x128xf32>
    %27 = vector.shape_cast %26 : vector<1x8x128xf32> to vector<8x128xf32>
    %28 = vector.shape_cast %25 : vector<8x128xf32> to vector<1x8x128xf32>
    tpu.vector_store %arg9[%c0_23, %c0_24, %c0_25], %28 {strides = array<i32>} : memref<1x8x128xf32, #tpu.memory_space<vmem>>, vector<1x8x128xf32>,
    return
  }
  func.func @transform_0(%arg0: i32, %arg1: i32) -> (i32, i32) {
    %c0_i32 = arith.constant 0 : i32
    %c0_i32_0 = arith.constant 0 : i32
    return %arg1, %c0_i32 : i32, i32
  }
  func.func @transform_1(%arg0: i32, %arg1: i32) -> (i32, i32, i32) {
    %c0_i32 = arith.constant 0 : i32
    %c0_i32_0 = arith.constant 0 : i32
    %c0_i32_1 = arith.constant 0 : i32
    return %arg0, %c0_i32, %c0_i32_0 : i32, i32, i32
  }
  func.func @transform_2(%arg0: i32, %arg1: i32) -> (i32, i32, i32) {
    %c0_i32 = arith.constant 0 : i32
    %c0_i32_0 = arith.constant 0 : i32
    %c0_i32_1 = arith.constant 0 : i32
    return %arg0, %c0_i32, %c0_i32_0 : i32, i32, i32
  }
  func.func @transform_3(%arg0: i32, %arg1: i32) -> (i32, i32, i32) {
    %c0_i32 = arith.constant 0 : i32
    %c0_i32_0 = arith.constant 0 : i32
    %c0_i32_1 = arith.constant 0 : i32
    return %arg0, %c0_i32, %c0_i32_0 : i32, i32, i32
  }
  func.func @transform_4(%arg0: i32, %arg1: i32) -> (i32, i32, i32) {
    %c0_i32 = arith.constant 0 : i32
    %c0_i32_0 = arith.constant 0 : i32
    %c0_i32_1 = arith.constant 0 : i32
    return %arg0, %c0_i32, %c0_i32_0 : i32, i32, i32
  }
  func.func @transform_5(%arg0: i32, %arg1: i32) -> (i32, i32, i32) {
    %c0_i32 = arith.constant 0 : i32
    %c0_i32_0 = arith.constant 0 : i32
    %c0_i32_1 = arith.constant 0 : i32
    return %arg0, %c0_i32, %c0_i32_0 : i32, i32, i32
  }
  func.func @transform_6(%arg0: i32, %arg1: i32) -> (i32, i32, i32) {
    %c0_i32 = arith.constant 0 : i32
    %c0_i32_0 = arith.constant 0 : i32
    %c0_i32_1 = arith.constant 0 : i32
    return %arg0, %c0_i32, %c0_i32_0 : i32, i32, i32
  }
  func.func @transform_7(%arg0: i32, %arg1: i32) -> (i32, i32, i32) {
    %c0_i32 = arith.constant 0 : i32
    %c0_i32_0 = arith.constant 0 : i32
    return %arg0, %arg1, %c0_i32 : i32, i32, i32
  }
}

</mosaic_0001>

<bundles_post_ra>
// kernel: tpu_custom_call.1
= control target key start
LH: loop header
LB: loop body
LE: loop exit
PB: predicated region body
PF: predicated region fallthrough
CT: control target
= control target key end

     0   :  { %s1671_s0 = inlined_call_operand.hbm [shape: f32[8,32], index: 0, kind: input, shape index: {}]   ;;  %s1672_s1 = inlined_call_operand.hbm [shape: f32[2,32,32], index: 1, kind: input, shape index: {}]   ;;  %s1673_s2 = inlined_call_operand.hbm [shape: f32[2,32,32], index: 2, kind: input, shape index: {}]   ;;  %s1674_s3 = inlined_call_operand.hbm [shape: f32[2,32,128], index: 3, kind: input, shape index: {}]   ;;  %s1675_s4 = inlined_call_operand.vmem [shape: f32[2,1,32], index: 4, kind: input, shape index: {}]   ;;  %s1676_s5 = inlined_call_operand.vmem [shape: f32[2,1,32], index: 5, kind: input, shape index: {}]   ;;  %s1677_s6 = inlined_call_operand.vmem [shape: f32[2,1,128], index: 6, kind: input, shape index: {}]   ;;  %s1678_s7 = inlined_call_operand.hbm [shape: f32[2,8,128], index: 7, kind: output, shape index: {}]  }
   0x1   :  { %1699 = sst [smem:[#allocation21_spill]] %s1672_s1 }
   0x2   :  { %1700 = sst [smem:[#allocation22_spill]] %s1673_s2 }
   0x3   :  { %12 = vsyncpa [#allocation3], 0 }
   0x4   :  { %13 = vsyncpa [#allocation6], 0 }
   0x5   :  { %15 = vsyncpa [#allocation6 + $0x1], 0 }
   0x6   :  { %16 = vsyncpa [#allocation9], 0 }
   0x7   :  { %18 = vsyncpa [#allocation9 + $0x1], 0 }
   0x8   :  { %19 = vsyncpa [#allocation4], 0 }
   0x9   :  { %21 = vsyncpa [#allocation4 + $0x1], 0  ;;  %s1332_s24 = smov 0   ;;  %s1334_s25 = smov 0  }
   0xa   :  { %s1336_s26 = smov 0   ;;  %s1338_s27 = smov 0  }
   0xb   :  { %s1340_s28 = smov 0   ;;  %s1342_s29 = smov 0  }
   0xc LB: > { %1701 = sst [smem:[#allocation15_spill]] %s1260_s24  ;;  %s39_s30 = sadd.s32 1, %s1276_s28  ;;  %s1280_s29 = sphi %s1342_s29, %s27_s29   ;;  %s1276_s28 = sphi %s1340_s28, %s1735_s28   ;;  %s1272_s27 = sphi %s1338_s27, %s1734_s27   ;;  %s1268_s26 = sphi %s1336_s26, %s1738_s26   ;;  %s1264_s25 = sphi %s1334_s25, %s1737_s25   ;;  %s1260_s24 = sphi %s1332_s24, %s1736_s24  }
   0xd   : > { %1702 = sst [smem:[#allocation16_spill]] %s1276_s28  ;;  %s72_s8 = sadd.s32 1, %s1268_s26 }
   0xe   : > { %1703 = sst [smem:[#allocation17_spill]] %s1280_s29  ;;  %p41_p0 = scmp.ge.s32.totalorder %s39_s30, 2 }
   0xf   : > { %p1679_p1 = scmp.ne.s32.totalorder %s1268_s26, %s1264_s25  ;;  %p80_p2 = scmp.eq.s32.totalorder %s1280_s29, 0 }
  0x10   : > { %s1740_s30 = smov (%p41_p0, %s39_s30), 0  ;;  %p1015_p5 = scmp.lt.s32.totalorder %s1280_s29, 2 }
  0x11   : > { %1704 = sst [smem:[#allocation18_spill]] %s1740_s30  ;;  %p81_p4 = por %p80_p2, %p1679_p1 }
  0x12   : > { %s69_s9 = ssub.s32 %s1276_s28, %s1740_s30  ;;  %s280_s10 = sand.u32 1, %s1280_s29  }
  0x13   : > { %p70_p6 = scmp.eq.s32.totalorder %s69_s9, 0  ;;  %s1680_s11 = sand.u32 1, %s1268_s26  }
  0x14   : > { %s1379_s12 = sshll.u32 %s1276_s28, 9  ;;  %s1386_s14 = sshll.u32 %s1680_s11, 5 }
  0x15   : > { %s1382_s13 = scalar_select %p70_p6, %s1268_s26, %s72_s8  }
  0x16   : > { %s1706_s1 = sld [smem:[#allocation21_spill]]  ;;  %p1394_p7 = pnand %p1015_p5, %p81_p4 }
  0x17   : > { %1705 = sst [smem:[#allocation19_spill]] %s1382_s13  ;;  %s284_s19 = scalar_lea.vmem [#allocation5], %s1386_s14 }
  0x18   : > { %s1707_s18 = scalar_select %p1394_p7, 1, 0 }
  0x19   : > { %s291_s20 = sshll.u32 %s284_s19, 4  ;;  %s1401_s21 = scalar_lea.sflag [#allocation6], %s280_s10  ;;  %s1399_s20 = int_to_ptr.vmem [resolvable:$true] %s291_s20 }
  0x1a   : > { %p1407_p9 = pneg %p1394_p7 }
  0x1c   : > { %s1392_s17 = scalar_lea.hbm %s1706_s1, %s1379_s12  ;;  %s1077_s15 = scalar_lea.hbm %s1706_s1, 1024 }
  0x1d   : > { %s1072_s22 = scalar_lea.hbm %s1392_s17, 512  ;;  %p1078_p12 = scmp.lt.u32.totalorder %s1392_s17, %s1706_s1 }
  0x1e   : > { %p1073_p8 = scmp.ne.s32.totalorder %s1392_s17, %s1072_s22  ;;  %p1079_p13 = scmp.lt.u32.totalorder %s1077_s15, %s1072_s22 }
  0x1f   : > { %s1708_s23 = scalar_select %p1407_p9, 1, 0 }
  0x20   : > { %p1075_p10 = pnand %p1407_p9, %p1073_p8  ;;  %p1080_p0 = por %p1079_p13, %p1078_p12 }
  0x21   : > { %p1081_p2 = scmp.lt.u32.totalorder %s1072_s22, %s1392_s17 }
  0x22   : > { %p1076_p11 = pneg %p1075_p10 }
  0x23   : > { %p1082_p4 = por %p1081_p2, %p1080_p0 }
  0x25   : > { %p1083_p5 = pnand %p1082_p4, %p1076_p11 }
  0x27   : > { %1086 = shalt.err (!%p1083_p5)
}
  0x28   : > { %s1087_s10 = scalar_lea.vmem %s1399_s20, 512  ;;  %s1282_s8 = smov [#allocation5]  }
  0x29   : > { %p1088_p6 = scmp.ne.s32.totalorder %s1399_s20, %s1087_s10  ;;  %s1092_s9 = sshll.u32 %s1282_s8, 4  ;;  %s1093_s9 = int_to_ptr.vmem [resolvable:$false] %s1092_s9 }
  0x2a   : > { %s1094_s16 = scalar_lea.vmem %s1093_s9, 1024  ;;  %p1095_p3 = scmp.lt.s32.totalorder %s1399_s20, %s1093_s9 }
  0x2b   : > { %p1090_p8 = pnand %p1088_p6, %p1407_p9  ;;  %p1096_p1 = scmp.lt.s32.totalorder %s1094_s16, %s1087_s10 }
  0x2d   : > { %p1091_p10 = pneg %p1090_p8  ;;  %p1097_p12 = por %p1096_p1, %p1095_p3 }
  0x2f   : > { %p1098_p13 = pnand %p1097_p12, %p1091_p10 }
  0x31   : > { %1101 = shalt.err (!%p1098_p13)
}
  0x32   : > { %s1681_s22 = smov 128   ;;  %s1683_s15 = smov 8  }
  0x33   : > { %1003 = dma.hbm_to_vmem [thread:$0]  (!%p1394_p7), %s1392_s17, 512, %s1399_s20, %s1401_s21, %s1681_s22, %s1681_s22, %s1683_s15  }
  0x34   : > { %s1435_s19 = sadd.s32 4294967295, %s1280_s29   ;;  %s886_s10 = sadd.s32 4294967294, %s1280_s29  }
  0x35   : > { %p85_p1 = scmp.ne.s32.totalorder %s1264_s25, %s1260_s24  ;;  %p1690_p3 = scmp.eq.s32.totalorder %s1435_s19, 0 }
  0x36   : > { %p241_p11 = scmp.eq.s32.totalorder %s1435_s19, 1  ;;  %p247_p0 = scmp.eq.s32.totalorder %s886_s10, 1 }
  0x37   : > { %p887_p2 = scmp.ge.s32.totalorder %s1280_s29, 1  ;;  %p1445_p4 = por %p1690_p3, %p85_p1 }
  0x38   : > { %p1710_p5 = scmp.ne.s32.totalorder %s1268_s26, %s1264_s25  ;;  %p1456_p8 = por %p247_p0, %p85_p1 }
  0x39   : > { %s1709_s8 = scalar_select %p1445_p4, 1, 0 }
  0x3a   : > { %p1452_p6 = por %p241_p11, %p1710_p5  ;;  %p254_p10 = scmp.lt.s32.totalorder %s1280_s29, 3 }
  0x3b   : > { %s1712_s20 = scalar_select %p1456_p8, 1, 0 }
  0x3c   : > { %s1711_s17 = scalar_select %p1452_p6, 1, 0 }
  0x3d   : > { %1713 = sst [smem:[#allocation20_spill]] %s1712_s20  ;;  %p1461_p12 = pnand %p887_p2, %p254_p10 }
  0x3e   : > { %s1285_s16 = smov [#allocation2]   ;;  %s1715_s2 = sld [smem:[#allocation22_spill]] }
  0x3f   : > { %s1714_s9 = scalar_select %p1461_p12, 1, 0 }
  0x40   : > { %s269_s10 = sshll.u32 %s1285_s16, 4  ;;  %p996_p13 = pneg %p1461_p12  ;;  %s1465_s10 = int_to_ptr.vmem [resolvable:$true] %s269_s10 }
  0x41   : > { %s305_s1 = scalar_lea.vmem [#allocation7], %s1386_s14 }
  0x42   : > { %s312_s30 = sshll.u32 %s305_s1, 4  ;;  %p1478_p1 = pnand %p996_p13, %p1690_p3  ;;  %s1482_s30 = int_to_ptr.vmem [resolvable:$true] %s312_s30 }
  0x44   : > { %s1473_s15 = scalar_lea.hbm %s1715_s2, %s1379_s12  ;;  %s1107_s13 = scalar_lea.hbm %s1715_s2, 1024 }
  0x45   : > { %s1716_s28 = scalar_select %p1478_p1, 1, 0 }
  0x46   : > { %s1102_s16 = scalar_lea.hbm %s1473_s15, 512  ;;  %p1108_p5 = scmp.lt.u32.totalorder %s1473_s15, %s1715_s2 }
  0x47   : > { %p1103_p11 = scmp.ne.s32.totalorder %s1473_s15, %s1102_s16  ;;  %p1109_p10 = scmp.lt.u32.totalorder %s1107_s13, %s1102_s16 }
  0x48   : > { %p1111_p3 = scmp.lt.u32.totalorder %s1102_s16, %s1473_s15 }
  0x49   : > { %p1105_p0 = pnand %p1103_p11, %p1407_p9  ;;  %p1110_p13 = por %p1109_p10, %p1108_p5 }
  0x4b   : > { %p1106_p2 = pneg %p1105_p0  ;;  %p1112_p8 = por %p1111_p3, %p1110_p13 }
  0x4d   : > { %p1113_p6 = pnand %p1112_p8, %p1106_p2 }
  0x4f   : > { %1116 = shalt.err (!%p1113_p6)
}
  0x50   : > { %s1117_s1 = scalar_lea.vmem %s1482_s30, 512  ;;  %s1286_s11 = smov [#allocation7]  }
  0x51   : > { %p1118_p11 = scmp.ne.s32.totalorder %s1482_s30, %s1117_s1  ;;  %s1122_s22 = sshll.u32 %s1286_s11, 4  ;;  %s1123_s22 = int_to_ptr.vmem [resolvable:$false] %s1122_s22 }
  0x52   : > { %s1124_s29 = scalar_lea.vmem %s1123_s22, 1024  ;;  %p1125_p12 = scmp.lt.s32.totalorder %s1482_s30, %s1123_s22 }
  0x53   : > { %p1120_p0 = pnand %p1118_p11, %p1407_p9  ;;  %p1126_p1 = scmp.lt.s32.totalorder %s1124_s29, %s1117_s1 }
  0x55   : > { %p1121_p4 = pneg %p1120_p0  ;;  %p1127_p5 = por %p1126_p1, %p1125_p12 }
  0x57   : > { %p1128_p10 = pnand %p1127_p5, %p1121_p4 }
  0x59   : > { %1131 = shalt.err (!%p1128_p10)
}
  0x5a   : > { %s1717_s13 = smov 8   ;;  %s1718_s20 = smov 128  }
  0x5b   : > { %1006 = dma.hbm_to_vmem [thread:$0]  (!%p1394_p7), %s1473_s15, 512, %s1482_s30, %s1401_s21, %s1718_s20, %s1718_s20, %s1717_s13  }
  0x5c   : > { %s1132_s11 = scalar_lea.hbm %s1671_s0, 128  ;;  %p1719_p4 = scmp.ne.s32.totalorder %s1716_s28, 0 }
  0x5d   : > { %p1133_p3 = scmp.ne.s32.totalorder %s1671_s0, %s1132_s11  ;;  %p1139_p1 = scmp.lt.u32.totalorder %s1132_s11, %s1671_s0 }
  0x5e   : > { %p1134_p6 = pneg %p1719_p4 }
  0x60   : > { %p1135_p8 = pnand %p1134_p6, %p1133_p3 }
  0x62   : > { %p1136_p12 = pneg %p1135_p8 }
  0x64   : > { %p1141_p2 = pnand %p1139_p1, %p1136_p12 }
  0x66   : > { %1144 = shalt.err (!%p1141_p2)
}
  0x67   : > { %s1145_s30 = scalar_lea.vmem %s1465_s10, 128  ;;  %p1153_p5 = scmp.lt.s32.totalorder %s1465_s10, %s1465_s10 }
  0x68   : > { %p1146_p13 = scmp.ne.s32.totalorder %s1465_s10, %s1145_s30  ;;  %p1154_p10 = scmp.lt.s32.totalorder %s1145_s30, %s1145_s30 }
  0x6a   : > { %p1148_p11 = pnand %p1146_p13, %p1134_p6  ;;  %p1155_p7 = por %p1154_p10, %p1153_p5 }
  0x6c   : > { %p1149_p0 = pneg %p1148_p11 }
  0x6e   : > { %p1156_p9 = pnand %p1155_p7, %p1149_p0 }
  0x70   : > { %1159 = shalt.err (!%p1156_p9)
}
  0x71   : > { %999 = dma.hbm_to_vmem [thread:$0]  (!%p1719_p4), %s1671_s0, 128, %s1465_s10, [#allocation3]  }
  0x72   : > { %s1534_s16 = scalar_lea.hbm %s1674_s3, %s1379_s12  ;;  %s326_s11 = scalar_lea.vmem [#allocation8], %s1386_s14 }
  0x73   : > { %s333_s28 = sshll.u32 %s326_s11, 4  ;;  %s1720_s22 = sand.u32 1, %s1268_s26   ;;  %s1537_s28 = int_to_ptr.vmem [resolvable:$true] %s333_s28 }
  0x74   : > { %s1541_s1 = scalar_lea.sflag [#allocation9], %s1720_s22  ;;  %s1160_s29 = scalar_lea.hbm %s1534_s16, 512 }
  0x75   : > { %p1161_p7 = scmp.ne.s32.totalorder %s1534_s16, %s1160_s29  ;;  %p1721_p9 = scmp.ne.s32.totalorder %s1708_s23, 0 }
  0x76   : > { %s1165_s12 = scalar_lea.hbm %s1674_s3, 1024  ;;  %p1166_p6 = scmp.lt.u32.totalorder %s1534_s16, %s1674_s3 }
  0x77   : > { %p1163_p3 = pnand %p1161_p7, %p1721_p9  ;;  %p1167_p8 = scmp.lt.u32.totalorder %s1165_s12, %s1160_s29 }
  0x78   : > { %p1169_p1 = scmp.lt.u32.totalorder %s1160_s29, %s1534_s16 }
  0x79   : > { %p1164_p4 = pneg %p1163_p3  ;;  %p1168_p12 = por %p1167_p8, %p1166_p6 }
  0x7b   : > { %p1170_p2 = por %p1169_p1, %p1168_p12 }
  0x7d   : > { %p1171_p13 = pnand %p1170_p2, %p1164_p4 }
  0x7f   : > { %1174 = shalt.err (!%p1171_p13)
}
  0x80   : > { %s1175_s14 = scalar_lea.vmem %s1537_s28, 512  ;;  %s1287_s21 = smov [#allocation8]  }
  0x81   : > { %p1176_p11 = scmp.ne.s32.totalorder %s1537_s28, %s1175_s14  ;;  %s1180_s15 = sshll.u32 %s1287_s21, 4  ;;  %s1181_s15 = int_to_ptr.vmem [resolvable:$false] %s1180_s15 }
  0x82   : > { %s1182_s11 = scalar_lea.vmem %s1181_s15, 1024  ;;  %p1183_p10 = scmp.lt.s32.totalorder %s1537_s28, %s1181_s15 }
  0x83   : > { %p1178_p0 = pnand %p1176_p11, %p1721_p9  ;;  %p1184_p7 = scmp.lt.s32.totalorder %s1182_s11, %s1175_s14 }
  0x85   : > { %p1179_p5 = pneg %p1178_p0  ;;  %p1185_p3 = por %p1184_p7, %p1183_p10 }
  0x87   : > { %p1186_p6 = pnand %p1185_p3, %p1179_p5 }
  0x89   : > { %1189 = shalt.err (!%p1186_p6)
}
  0x8a   : > { %p1722_p4 = scmp.ne.s32.totalorder %s1707_s18, 0  ;;  %p1723_p9 = scmp.ne.s32.totalorder %s1714_s9, 0 }
  0x8b   : > { %p1724_p8 = scmp.eq.s32.totalorder (!%p1723_p9), %s1435_s19, 0 }
  0x8c   : > { %1009 = dma.hbm_to_vmem [thread:$0]  (!%p1722_p4), %s1534_s16, 512, %s1537_s28, %s1541_s1, %s1718_s20, %s1718_s20, %s1717_s13  }
  0x8d   : > { %363 = sbr.rel (%p1723_p9) target bundleno = 827 (0x33b), region = 48 }
  0x94   : > { %1243 = dma.done.wait (%p1724_p8), [#allocation3], 128   ;;  %p1725_p12 = pmov %p1724_p8 }
  0x95   : > { %s369_s18 = sand.u32 1, %s1435_s19   ;;  %s1576_s23 = sand.u32 1, %s1264_s25  }
  0x96   : > { %1245 = vsyncadd (%p1725_p12), [#allocation3], 4294967168  ;;  %s901_s22 = sshll.u32 %s1576_s23, 5  ;;  %s370_s29 = scalar_lea.sflag [#allocation6], %s369_s18 }
  0x97   : > { %s373_s10 = scalar_lea.vmem [#allocation5], %s901_s22  ;;  %p1726_p1 = scmp.ne.s32.totalorder %s1709_s8, 0 }
  0x99   : > { %1247 = dma.done.wait (%p1726_p1), %s370_s29, 1024  }
  0x9a   : > { %1249 = vsyncadd (%p1726_p1), %s370_s29, 4294966272  ;;  %s1583_s9 = scalar_lea.vmem [#allocation7], %s901_s22  ;;  %s388_s13 = scalar_lea.sflag [#allocation9], %s1576_s23 }
  0x9b   : > { %s1586_s20 = scalar_lea.vmem [#allocation8], %s901_s22 }
  0x9c   : > { %1251 = dma.done.wait (%p1726_p1), %s388_s13, 512  }
  0x9d   : > { %1253 = vsyncadd (%p1726_p1), %s388_s13, 4294966784  ;;  %v1288_v0 = vmov 0.0|0.0   ;;  %vm1289_vm0 = vmmov 0   ;;  %v1290_v1 = vmov 0.0   ;;  %v451_v2 = vld [vmem:[%s373_s10] sm:$0xff]  ;;  %v452_v3 = vld [vmem:[%s373_s10 + $0x8] sm:$0xff] }
  0x9e   : > { %966 = vmatprep.subr.bf16.mxu0 %v1288_v0  ;;  %941 = vmatprep.mubr.msk.f32.mxu0 %vm1289_vm0, %v1290_v1  ;;  %v453_v4 = vld [vmem:[%s373_s10 + $0x10] sm:$0xff]  ;;  %v967_v5 = vpack.c.bf16 %v452_v3, %v451_v2  ;;  %v454_v6 = vld [vmem:[%s373_s10 + $0x18] sm:$0xff]  ;;  %v537_v7 = vld [vmem:[%s1583_s9] sm:$0xff]  ;;  %vm462_vm1 = vcmask 261120   ;;  %p441_p2 = scmp.lt.s32.totalorder %s1272_s27, 1  ;;  %s904_s2 = sshll.u32 %s1576_s23, 3 }
  0x9f   : > { %972 = vmatprep.subr.bf16.mxu1 %v1288_v0  ;;  %952 = vmatprep.mubr.msk.f32.mxu1 %vm1289_vm0, %v1290_v1  ;;  %v538_v8 = vld [vmem:[%s1583_s9 + $0x8] sm:$0xff]  ;;  %v970_v9 = vpack.c.bf16 %v454_v6, %v453_v4  ;;  %v450_v11 = vld [vmem:[#allocation2] sm:$0xff]  ;;  %v539_v12 = vld [vmem:[%s1583_s9 + $0x10] sm:$0xff]  ;;  %s912_s15 = sshll.u32 %s1272_s27, 7  ;;  %s440_s11 = scalar_lea.vmem [#allocation10], %s904_s2 }
  0xa0   : > { %968 = vmatpush3.bf16.msra.mxu0 %v967_v5  ;;  %v973_v10 = vpack.c.bf16 %v538_v8, %v537_v7  ;;  %v540_v13 = vld [vmem:[%s1583_s9 + $0x18] sm:$0xff]  ;;  %v622_v15 = vld [vmem:[%s1586_s20] sm:$0xff]  ;;  %v623_v16 = vld [vmem:[%s1586_s20 + $0x8] sm:$0xff]  ;;  %s442_s19 = scalar_select %p441_p2, %s1272_s27, 1 }
  0xa1   : > { %969 = vmatprep.subr.bf16.mxu0 %v1288_v0  ;;  %v976_v14 = vpack.c.bf16 %v540_v13, %v539_v12  ;;  %v979_v17 = vpack.c.bf16 %v623_v16, %v622_v15  ;;  %v624_v23 = vld [vmem:[%s1586_s20 + $0x10] sm:$0xff]  ;;  %v625_v24 = vld [vmem:[%s1586_s20 + $0x18] sm:$0xff]  ;;  %s722_s18 = sshll.u32 %s440_s11, 4  ;;  %s1622_s10 = scalar_lea.hbm %s1678_s7, %s912_s15  ;;  %s1624_s18 = int_to_ptr.vmem [resolvable:$true] %s722_s18 }
  0xa2   : > { %974 = vmatpush3.bf16.msra.mxu1 %v973_v10  ;;  %s443_s28 = scalar_lea.vmem %s1675_s4, %s442_s19  ;;  %v982_v25 = vpack.c.bf16 %v625_v24, %v624_v23  ;;  %s446_s12 = scalar_lea.vmem %s1676_s5, %s442_s19 }
  0xa3   : > { %975 = vmatprep.subr.bf16.mxu1 %v1288_v0  ;;  %v905_v18 = vld [vmem:[%s443_s28] ss:$0 sm:$0xff]  ;;  %s449_s21 = scalar_lea.vmem %s1677_s6, %s442_s19  ;;  %s708_s9 = scalar_lea.sflag [#allocation4], %s1576_s23 }
  0xa4   : > { %971 = vmatpush3.bf16.msra.mxu0 %v970_v9  ;;  %v907_v26 = vld [vmem:[%s446_s12] ss:$0 sm:$0xff]  ;;  %s1190_s13 = scalar_lea.vmem %s1624_s18, 128  ;;  %p1727_p11 = scmp.ne.s32.totalorder %s1711_s17, 0 }
  0xa5   : > { %978 = vmatprep.subr.bf16.mxu0 %v1288_v0  ;;  %v909_v31 = vld [vmem:[%s449_s21] ss:$0 sm:$0xff]  ;;  %p1191_p13 = scmp.ne.s32.totalorder %s1624_s18, %s1190_s13  ;;  %s1291_s27 = smov [#allocation10]  }
  0xa6   : > { %977 = vmatpush3.bf16.msra.mxu1 %v976_v14  ;;  %s1194_s20 = sshll.u32 %s1291_s27, 4  ;;  %s1195_s20 = int_to_ptr.vmem [resolvable:$false] %s1194_s20 }
  0xa7   : > { %942 = vmatmul.mubr.msk.f32.vlgmr.msra.gmra.mrb[0].mxu0 %vm462_vm1, %v450_v11  ;;  %p1192_p0 = pnand %p1191_p13, %p1727_p11  ;;  %s1196_s19 = scalar_lea.vmem %s1195_s20, 256 }
  0xa8   : > { %963 = vmatprep.mubr.msk.f32.mxu0 %vm1289_vm0, %v1290_v1  ;;  %980 = vmatpush3.bf16.msra.mxu0 %v979_v17  ;;  %p1197_p10 = scmp.lt.s32.totalorder %s1624_s18, %s1195_s20  ;;  %p1198_p7 = scmp.lt.s32.totalorder %s1196_s19, %s1190_s13 }
  0xa9   : > { %981 = vmatprep.subr.bf16.mxu0 %v1288_v0  ;;  %p1193_p5 = pneg %p1192_p0 }
  0xaa   : > { %p1199_p3 = por %p1198_p7, %p1197_p10 }
  0xac   : > { %983 = vmatpush3.bf16.msra.mxu0 %v982_v25  ;;  %p1200_p6 = pnand %p1199_p3, %p1193_p5 }
 0x17a   : > { %v532_v19 = vpop.f32.mrb[0].mxu0 }
 0x17b   : > { %v533_v20 = vadd.f32 %v905_v18, %v532_v19  ;;  %v943_v21 = vpop.f32.mrb[1].mxu0 }
 0x17d   : > { %v536_v22 = vmax.f32 %v533_v20, 0.0 }
 0x17f   : > { %953 = vmatmul.mubr.msk.f32.vlgmr.msra.gmra.mrb[0].mxu1 %vm462_vm1, %v536_v22 }
 0x252   : > { %v617_v27 = vpop.f32.mrb[0].mxu1 }
 0x253   : > { %v618_v28 = vadd.f32 %v907_v26, %v617_v27  ;;  %v954_v29 = vpop.f32.mrb[1].mxu1 }
 0x255   : > { %v621_v30 = vmax.f32 %v618_v28, 0.0 }
 0x257   : > { %964 = vmatmul.mubr.msk.f32.vlgmr.msra.gmra.mrb[2].mxu0 %vm462_vm1, %v621_v30 }
 0x32a   : > { %v702_v32 = vpop.f32.mrb[2].mxu0 }
 0x32b   : > { %v703_v33 = vadd.f32 %v909_v31, %v702_v32  ;;  %v965_v34 = vpop.f32.mrb[3].mxu0 }
 0x32d   : > { %706 = vst [vmem:[%s440_s11] sm:$0xff] %v703_v33 }
 0x32e   : > { %1203 = shalt.err (!%p1200_p6)
}
 0x32f   : > { %s1204_s23 = scalar_lea.hbm %s1622_s10, 128  ;;  %s1208_s28 = scalar_lea.hbm %s1678_s7, 256 }
 0x330   : > { %p1205_p4 = scmp.ne.s32.totalorder %s1622_s10, %s1204_s23  ;;  %p1209_p12 = scmp.lt.u32.totalorder %s1622_s10, %s1678_s7 }
 0x331   : > { %p1210_p1 = scmp.lt.u32.totalorder %s1208_s28, %s1204_s23  ;;  %p1212_p13 = scmp.lt.u32.totalorder %s1204_s23, %s1622_s10 }
 0x332   : > { %p1206_p9 = pnand %p1205_p4, %p1727_p11 }
 0x333   : > { %p1211_p2 = por %p1210_p1, %p1209_p12 }
 0x334   : > { %p1207_p8 = pneg %p1206_p9 }
 0x335   : > { %p1213_p0 = por %p1212_p13, %p1211_p2 }
 0x337   : > { %p1214_p5 = pnand %p1213_p0, %p1207_p8 }
 0x339   : > { %1217 = shalt.err (!%p1214_p5)
}
 0x33a   : > { %994 = dma.vmem_to_hbm [thread:$0]  (%p1727_p11), %s1624_s18, 128, %s1622_s10, %s708_s9  }
 0x33b PF: > { %s1728_s12 = sld [smem:[#allocation15_spill]]  ;;  %s1729_s2 = sld [smem:[#allocation20_spill]] }
 0x33c   : > { %s1730_s24 = sld [smem:[#allocation17_spill]] }
 0x341   : > { %s734_s14 = sand.u32 1, %s1728_s12   ;;  %p1731_p10 = scmp.ne.s32.totalorder %s1729_s2, 0 }
 0x342   : > { %p1732_p7 = scmp.ge.s32.totalorder %s1730_s24, 2  ;;  %s735_s21 = scalar_lea.sflag [#allocation4], %s734_s14 }
 0x344   : > { %p1011_p3 = pnand %p1732_p7, %p1731_p10 }
 0x346   : > { %1255 = dma.done.wait (!%p1011_p3), %s735_s21, 128  }
 0x347   : > { %1257 = vsyncadd (!%p1011_p3), %s735_s21, 4294967168  ;;  %s27_s29 = sadd.s32 1, %s1730_s24   ;;  %s1733_s17 = sld [smem:[#allocation19_spill]] }
 0x348   : > { %p24_p6 = scmp.ge.s32.totalorder %s27_s29, 4   ;;  %s1734_s27 = sld [smem:[#allocation16_spill]] }
 0x349   : > { %s1735_s28 = sld [smem:[#allocation18_spill]]  ;;  %s1736_s24 = smov %s1264_s25 }
 0x34a   : > { %s1737_s25 = smov %s1268_s26  ;;  %26 = sbr.rel (!%p24_p6) target bundleno = 12 (0xc), region = 132 }
 0x34d   : > { %s1738_s26 = smov %s1733_s17 }
 0x351   :  { %740 = vsyncpa [#allocation3], 1 }
 0x352   :  { %742 = vsyncpa [#allocation3 + $0x1], 1 }
 0x353   :  { %743 = vsyncpa [#allocation6], 1 }
 0x354   :  { %745 = vsyncpa [#allocation6 + $0x1], 1 }
 0x355   :  { %746 = vsyncpa [#allocation9], 1 }
 0x356   :  { %748 = vsyncpa [#allocation9 + $0x1], 1 }
 0x357   :  { %749 = vsyncpa [#allocation4], 1 }
 0x358   :  { %751 = vsyncpa [#allocation4 + $0x1], 1 }

</bundles_post_ra>
